<compile_context>
chip_gen: v6e
topology: v6e:2x2x1
jax: 0.10.0
libtpu: 0.0.40
codegen_flags: <defaults>
</compile_context>

<pallas_src>
import jax
import jax.numpy as jnp
from jax.experimental import pallas as pl
from jax.experimental.pallas import tpu as pltpu


def _gru_encoder_kernel(ids_ref,      # SMEM (B,) int32   -- scalar prefetch
                        h_ref,        # VMEM (B, H) f32
                        emb_hbm,      # HBM  (V, E) f32   -- memory_space=pl.ANY
                        wi_ref,       # VMEM (E, 3H) bf16 -- W_ih^T, gates [r|z|n]
                        wh_ref,       # VMEM (H, 3H) bf16 -- W_hh^T, gates [r|z|n]
                        bias_ref,     # VMEM (2, 3H) f32  -- folded biases (lane-major)
                        h_out_ref,    # VMEM (B, H) f32   (aliased with h_ref)
                        x_buf,        # VMEM (B, E) f32 scratch: gathered embedding rows
                        gather_sems): # DMA semaphores (B,)
    B, H = h_ref.shape

    # ---- Embedding gather: DMA only the B selected rows straight out of HBM. ----
    def _row_copy(b):
        return pltpu.make_async_copy(
            emb_hbm.at[pl.ds(ids_ref[b], 1), :],     # (1, E) row at token id
            x_buf.at[pl.ds(b, 1), :],
            gather_sems.at[b])

    for b in range(B):            # B is small & static -> fully unrolled issue
        _row_copy(b).start()
    for b in range(B):
        _row_copy(b).wait()

    x = x_buf[...]                                   # (B, E)  f32
    h = h_ref[...]                                   # (B, H)  f32

    # ---- Two fused MXU matmuls (bf16 operands, f32 accumulation). ----
    gi = jnp.dot(x.astype(jnp.bfloat16), wi_ref[...],
                 preferred_element_type=jnp.float32) + bias_ref[0:1, :]   # (B, 3H)
    gh = jnp.dot(h.astype(jnp.bfloat16), wh_ref[...],
                 preferred_element_type=jnp.float32) + bias_ref[1:2, :]   # (B, 3H)

    # ---- GRU cell (PyTorch gate order r, z, n); elementwise math in f32. ----
    r = jax.nn.sigmoid(gi[:, 0:H] + gh[:, 0:H])
    z = jax.nn.sigmoid(gi[:, H:2 * H] + gh[:, H:2 * H])
    n = jnp.tanh(gi[:, 2 * H:] + r * gh[:, 2 * H:])
    h_out_ref[...] = (1.0 - z) * n + z * h


def prepare_encoder_params(params):
    """One-time weight preparation (hoisted out of the per-step forward path)."""
    H = params["weight_hh_l0"].shape[-1]
    w_ih = params["weight_ih_l0"].astype(jnp.float32)    # (3H, E), rows [r|z|n]
    w_hh = params["weight_hh_l0"].astype(jnp.float32)    # (3H, H)
    b_ih = params["bias_ih_l0"].astype(jnp.float32)      # (3H,)
    b_hh = params["bias_hh_l0"].astype(jnp.float32)      # (3H,)

    # r and z add both biases inside the sigmoid -> fold; the n gate keeps b_in
    # on the input side and b_hn on the recurrent side (which is gated by r).
    bias_i = jnp.concatenate([b_ih[0:H] + b_hh[0:H],
                              b_ih[H:2 * H] + b_hh[H:2 * H],
                              b_ih[2 * H:3 * H]])                        # (3H,)
    bias_h = jnp.concatenate([jnp.zeros((2 * H,), jnp.float32),
                              b_hh[2 * H:3 * H]])                        # (3H,)
    return {
        "embedding": params["embedding"].astype(jnp.float32),            # (V, E), stays in HBM
        "wi": w_ih.T.astype(jnp.bfloat16),                               # (E, 3H)
        "wh": w_hh.T.astype(jnp.bfloat16),                               # (H, 3H)
        "bias": jnp.stack([bias_i, bias_h], axis=0),                     # (2, 3H) f32
    }


@jax.jit
def encoder_rnn_forward(input_ids, hidden, prep):
    """input_ids: (B,) int tokens ; hidden: (1, B, H) f32.

    Returns (output, hidden) like the PyTorch module: both (1, B, H)."""
    B = input_ids.shape[0]
    H = hidden.shape[-1]
    V, E = prep["embedding"].shape

    ids = input_ids.astype(jnp.int32)
    h0 = hidden[0].astype(jnp.float32)                    # (B, H)

    vmem = pltpu.MemorySpace.VMEM
    grid_spec = pltpu.PrefetchScalarGridSpec(
        num_scalar_prefetch=1,                            # ids -> SMEM
        grid=(1,),
        in_specs=[
            pl.BlockSpec((B, H), lambda i, ids: (0, 0), memory_space=vmem),       # h0
            pl.BlockSpec(memory_space=pl.ANY),                                     # embedding stays in HBM
            pl.BlockSpec((E, 3 * H), lambda i, ids: (0, 0), memory_space=vmem),    # W_ih^T (bf16)
            pl.BlockSpec((H, 3 * H), lambda i, ids: (0, 0), memory_space=vmem),    # W_hh^T (bf16)
            pl.BlockSpec((2, 3 * H), lambda i, ids: (0, 0), memory_space=vmem),    # folded biases
        ],
        out_specs=pl.BlockSpec((B, H), lambda i, ids: (0, 0), memory_space=vmem),
        scratch_shapes=[
            pltpu.VMEM((B, E), jnp.float32),              # gathered embedding rows
            pltpu.SemaphoreType.DMA((B,)),
        ],
    )

    h_new = pl.pallas_call(
        _gru_encoder_kernel,
        grid_spec=grid_spec,
        out_shape=jax.ShapeDtypeStruct((B, H), jnp.float32),
        # call arg order: (ids, h0, emb, wi, wh, bias) -> h0 is input index 1.
        input_output_aliases={1: 0},
        compiler_params=pltpu.CompilerParams(dimension_semantics=("arbitrary",)),
    )(ids, h0, prep["embedding"], prep["wi"], prep["wh"], prep["bias"])

    # seq_len == 1, single layer, unidirectional => output[0] == hidden[0] == h_new
    return h_new[None, :, :], h_new[None, :, :]


def _reference_forward(input_ids, hidden, params):
    """Pure-JAX (f32) reference of the PyTorch semantics, for a sanity check."""
    H = hidden.shape[-1]
    x = params["embedding"][input_ids]                    # (B, E)
    h = hidden[0]
    gi = x @ params["weight_ih_l0"].T + params["bias_ih_l0"]
    gh = h @ params["weight_hh_l0"].T + params["bias_hh_l0"]
    r = jax.nn.sigmoid(gi[:, 0:H] + gh[:, 0:H])
    z = jax.nn.sigmoid(gi[:, H:2 * H] + gh[:, H:2 * H])
    n = jnp.tanh(gi[:, 2 * H:] + r * gh[:, 2 * H:])
    h_new = (1.0 - z) * n + z * h
    return h_new[None], h_new[None]


def init_params(key, vocab_size, embedding_size, hidden_size):
    k_e, k_wih, k_whh, k_bih, k_bhh = jax.random.split(key, 5)
    bound = 1.0 / jnp.sqrt(hidden_size)
    return {
        "embedding":    jax.random.normal(k_e, (vocab_size, embedding_size), jnp.float32),
        "weight_ih_l0": jax.random.uniform(k_wih, (3 * hidden_size, embedding_size),
                                           jnp.float32, -bound, bound),
        "weight_hh_l0": jax.random.uniform(k_whh, (3 * hidden_size, hidden_size),
                                           jnp.float32, -bound, bound),
        "bias_ih_l0":   jax.random.uniform(k_bih, (3 * hidden_size,),
                                           jnp.float32, -bound, bound),
        "bias_hh_l0":   jax.random.uniform(k_bhh, (3 * hidden_size,),
                                           jnp.float32, -bound, bound),
    }


if __name__ == "__main__":
    VOCAB, EMBED, HIDDEN, BATCH = 50, 128, 32, 8

    key = jax.random.PRNGKey(0)
    k_params, k_ids, k_h = jax.random.split(key, 3)
    raw_params = init_params(k_params, VOCAB, EMBED, HIDDEN)
    prep = prepare_encoder_params(raw_params)            # one-time weight prep

    input_ids = jax.random.randint(k_ids, (BATCH,), 0, VOCAB, dtype=jnp.int32)
    # Non-zero hidden exercises the recurrent (W_hh) path; initHidden()'s zeros work too.
    hidden = 0.1 * jax.random.normal(k_h, (1, BATCH, HIDDEN), jnp.float32)

    output, hidden_out = encoder_rnn_forward(input_ids, hidden, prep)
    output = jax.block_until_ready(output)
    hidden_out = jax.block_until_ready(hidden_out)

    ref_out, ref_hid = _reference_forward(input_ids, hidden, raw_params)
    assert output.shape == (1, BATCH, HIDDEN) and hidden_out.shape == (1, BATCH, HIDDEN)
    # bf16 MXU operands with f32 accumulation: ~1e-3 typical deviation from the f32 reference.
    assert jnp.allclose(output, ref_out, atol=5e-2, rtol=0.0), \
        float(jnp.max(jnp.abs(output - ref_out)))
    assert jnp.allclose(hidden_out, ref_hid, atol=5e-2, rtol=0.0)

    print("KERNEL_OK")
</pallas_src>

<mosaic_0001>
module attributes {stable_mosaic.version = 11 : i64} {
  func.func @_gru_encoder_kernel(%arg0: i32, %arg1: memref<8xi32, #tpu.memory_space<smem>>, %arg2: memref<8x32xf32, #tpu.memory_space<vmem>>, %arg3: memref<50x128xf32, #tpu.memory_space<any>>, %arg4: memref<128x96xbf16, #tpu.memory_space<vmem>>, %arg5: memref<32x96xbf16, #tpu.memory_space<vmem>>, %arg6: memref<2x96xf32, #tpu.memory_space<vmem>>, %arg7: memref<8x32xf32, #tpu.memory_space<vmem>>, %arg8: memref<8x128xf32, #tpu.memory_space<vmem>>, %arg9: memref<8x!tpu.dma_semaphore, #tpu.memory_space<semaphore_mem>>) attributes {dimension_semantics = [#tpu.dimension_semantics<arbitrary>], iteration_bounds = array<i64: 1>, scalar_prefetch = 1 : i64, scratch_operands = 2 : i64, tpu.core_type = #tpu.core_type<tc>, window_params = [{pipeline_mode = #tpu.pipeline_mode<synchronous>, transform_indices = @transform_0, window_bounds = array<i64: 8, 32>}, {}, {pipeline_mode = #tpu.pipeline_mode<synchronous>, transform_indices = @transform_2, window_bounds = array<i64: 128, 96>}, {pipeline_mode = #tpu.pipeline_mode<synchronous>, transform_indices = @transform_3, window_bounds = array<i64: 32, 96>}, {pipeline_mode = #tpu.pipeline_mode<synchronous>, transform_indices = @transform_4, window_bounds = array<i64: 2, 96>}, {pipeline_mode = #tpu.pipeline_mode<synchronous>, transform_indices = @transform_5, window_bounds = array<i64: 8, 32>}]} {
    %c0 = arith.constant 0 : index
    %0 = memref.load %arg1[%c0] : memref<8xi32, #tpu.memory_space<smem>>
    %c0_i32 = arith.constant 0 : i32
    %c0_i32_0 = arith.constant 0 : i32
    %1 = tpu.memref_slice %arg3[%0, %c0_i32_0] : memref<50x128xf32, #tpu.memory_space<any>> -> memref<1x128xf32, #tpu.memory_space<any>>
    %c0_i32_1 = arith.constant 0 : i32
    %c0_i32_2 = arith.constant 0 : i32
    %2 = tpu.memref_slice %arg8[%c0_i32_1, %c0_i32_2] : memref<8x128xf32, #tpu.memory_space<vmem>> -> memref<1x128xf32, #tpu.memory_space<vmem>>
    %3 = tpu.memref_slice %arg9[%c0_i32] : memref<8x!tpu.dma_semaphore, #tpu.memory_space<semaphore_mem>> -> memref<1x!tpu.dma_semaphore, #tpu.memory_space<semaphore_mem>>
    %4 = tpu.memref_squeeze %3 : memref<1x!tpu.dma_semaphore, #tpu.memory_space<semaphore_mem>> -> memref<!tpu.dma_semaphore, #tpu.memory_space<semaphore_mem>>
    tpu.enqueue_dma source(%1 : memref<1x128xf32, #tpu.memory_space<any>>) target(%2 : memref<1x128xf32, #tpu.memory_space<vmem>>) target_semaphore(%4 : memref<!tpu.dma_semaphore, #tpu.memory_space<semaphore_mem>>)
    %c1 = arith.constant 1 : index
    %5 = memref.load %arg1[%c1] : memref<8xi32, #tpu.memory_space<smem>>
    %c1_i32 = arith.constant 1 : i32
    %c0_i32_3 = arith.constant 0 : i32
    %6 = tpu.memref_slice %arg3[%5, %c0_i32_3] : memref<50x128xf32, #tpu.memory_space<any>> -> memref<1x128xf32, #tpu.memory_space<any>>
    %c1_i32_4 = arith.constant 1 : i32
    %c0_i32_5 = arith.constant 0 : i32
    %7 = tpu.memref_slice %arg8[%c1_i32_4, %c0_i32_5] : memref<8x128xf32, #tpu.memory_space<vmem>> -> memref<1x128xf32, #tpu.memory_space<vmem>>
    %8 = tpu.memref_slice %arg9[%c1_i32] : memref<8x!tpu.dma_semaphore, #tpu.memory_space<semaphore_mem>> -> memref<1x!tpu.dma_semaphore, #tpu.memory_space<semaphore_mem>>
    %9 = tpu.memref_squeeze %8 : memref<1x!tpu.dma_semaphore, #tpu.memory_space<semaphore_mem>> -> memref<!tpu.dma_semaphore, #tpu.memory_space<semaphore_mem>>
    tpu.enqueue_dma source(%6 : memref<1x128xf32, #tpu.memory_space<any>>) target(%7 : memref<1x128xf32, #tpu.memory_space<vmem>>) target_semaphore(%9 : memref<!tpu.dma_semaphore, #tpu.memory_space<semaphore_mem>>)
    %c2 = arith.constant 2 : index
    %10 = memref.load %arg1[%c2] : memref<8xi32, #tpu.memory_space<smem>>
    %c2_i32 = arith.constant 2 : i32
    %c0_i32_6 = arith.constant 0 : i32
    %11 = tpu.memref_slice %arg3[%10, %c0_i32_6] : memref<50x128xf32, #tpu.memory_space<any>> -> memref<1x128xf32, #tpu.memory_space<any>>
    %c2_i32_7 = arith.constant 2 : i32
    %c0_i32_8 = arith.constant 0 : i32
    %12 = tpu.memref_slice %arg8[%c2_i32_7, %c0_i32_8] : memref<8x128xf32, #tpu.memory_space<vmem>> -> memref<1x128xf32, #tpu.memory_space<vmem>>
    %13 = tpu.memref_slice %arg9[%c2_i32] : memref<8x!tpu.dma_semaphore, #tpu.memory_space<semaphore_mem>> -> memref<1x!tpu.dma_semaphore, #tpu.memory_space<semaphore_mem>>
    %14 = tpu.memref_squeeze %13 : memref<1x!tpu.dma_semaphore, #tpu.memory_space<semaphore_mem>> -> memref<!tpu.dma_semaphore, #tpu.memory_space<semaphore_mem>>
    tpu.enqueue_dma source(%11 : memref<1x128xf32, #tpu.memory_space<any>>) target(%12 : memref<1x128xf32, #tpu.memory_space<vmem>>) target_semaphore(%14 : memref<!tpu.dma_semaphore, #tpu.memory_space<semaphore_mem>>)
    %c3 = arith.constant 3 : index
    %15 = memref.load %arg1[%c3] : memref<8xi32, #tpu.memory_space<smem>>
    %c3_i32 = arith.constant 3 : i32
    %c0_i32_9 = arith.constant 0 : i32
    %16 = tpu.memref_slice %arg3[%15, %c0_i32_9] : memref<50x128xf32, #tpu.memory_space<any>> -> memref<1x128xf32, #tpu.memory_space<any>>
    %c3_i32_10 = arith.constant 3 : i32
    %c0_i32_11 = arith.constant 0 : i32
    %17 = tpu.memref_slice %arg8[%c3_i32_10, %c0_i32_11] : memref<8x128xf32, #tpu.memory_space<vmem>> -> memref<1x128xf32, #tpu.memory_space<vmem>>
    %18 = tpu.memref_slice %arg9[%c3_i32] : memref<8x!tpu.dma_semaphore, #tpu.memory_space<semaphore_mem>> -> memref<1x!tpu.dma_semaphore, #tpu.memory_space<semaphore_mem>>
    %19 = tpu.memref_squeeze %18 : memref<1x!tpu.dma_semaphore, #tpu.memory_space<semaphore_mem>> -> memref<!tpu.dma_semaphore, #tpu.memory_space<semaphore_mem>>
    tpu.enqueue_dma source(%16 : memref<1x128xf32, #tpu.memory_space<any>>) target(%17 : memref<1x128xf32, #tpu.memory_space<vmem>>) target_semaphore(%19 : memref<!tpu.dma_semaphore, #tpu.memory_space<semaphore_mem>>)
    %c4 = arith.constant 4 : index
    %20 = memref.load %arg1[%c4] : memref<8xi32, #tpu.memory_space<smem>>
    %c4_i32 = arith.constant 4 : i32
    %c0_i32_12 = arith.constant 0 : i32
    %21 = tpu.memref_slice %arg3[%20, %c0_i32_12] : memref<50x128xf32, #tpu.memory_space<any>> -> memref<1x128xf32, #tpu.memory_space<any>>
    %c4_i32_13 = arith.constant 4 : i32
    %c0_i32_14 = arith.constant 0 : i32
    %22 = tpu.memref_slice %arg8[%c4_i32_13, %c0_i32_14] : memref<8x128xf32, #tpu.memory_space<vmem>> -> memref<1x128xf32, #tpu.memory_space<vmem>>
    %23 = tpu.memref_slice %arg9[%c4_i32] : memref<8x!tpu.dma_semaphore, #tpu.memory_space<semaphore_mem>> -> memref<1x!tpu.dma_semaphore, #tpu.memory_space<semaphore_mem>>
    %24 = tpu.memref_squeeze %23 : memref<1x!tpu.dma_semaphore, #tpu.memory_space<semaphore_mem>> -> memref<!tpu.dma_semaphore, #tpu.memory_space<semaphore_mem>>
    tpu.enqueue_dma source(%21 : memref<1x128xf32, #tpu.memory_space<any>>) target(%22 : memref<1x128xf32, #tpu.memory_space<vmem>>) target_semaphore(%24 : memref<!tpu.dma_semaphore, #tpu.memory_space<semaphore_mem>>)
    %c5 = arith.constant 5 : index
    %25 = memref.load %arg1[%c5] : memref<8xi32, #tpu.memory_space<smem>>
    %c5_i32 = arith.constant 5 : i32
    %c0_i32_15 = arith.constant 0 : i32
    %26 = tpu.memref_slice %arg3[%25, %c0_i32_15] : memref<50x128xf32, #tpu.memory_space<any>> -> memref<1x128xf32, #tpu.memory_space<any>>
    %c5_i32_16 = arith.constant 5 : i32
    %c0_i32_17 = arith.constant 0 : i32
    %27 = tpu.memref_slice %arg8[%c5_i32_16, %c0_i32_17] : memref<8x128xf32, #tpu.memory_space<vmem>> -> memref<1x128xf32, #tpu.memory_space<vmem>>
    %28 = tpu.memref_slice %arg9[%c5_i32] : memref<8x!tpu.dma_semaphore, #tpu.memory_space<semaphore_mem>> -> memref<1x!tpu.dma_semaphore, #tpu.memory_space<semaphore_mem>>
    %29 = tpu.memref_squeeze %28 : memref<1x!tpu.dma_semaphore, #tpu.memory_space<semaphore_mem>> -> memref<!tpu.dma_semaphore, #tpu.memory_space<semaphore_mem>>
    tpu.enqueue_dma source(%26 : memref<1x128xf32, #tpu.memory_space<any>>) target(%27 : memref<1x128xf32, #tpu.memory_space<vmem>>) target_semaphore(%29 : memref<!tpu.dma_semaphore, #tpu.memory_space<semaphore_mem>>)
    %c6 = arith.constant 6 : index
    %30 = memref.load %arg1[%c6] : memref<8xi32, #tpu.memory_space<smem>>
    %c6_i32 = arith.constant 6 : i32
    %c0_i32_18 = arith.constant 0 : i32
    %31 = tpu.memref_slice %arg3[%30, %c0_i32_18] : memref<50x128xf32, #tpu.memory_space<any>> -> memref<1x128xf32, #tpu.memory_space<any>>
    %c6_i32_19 = arith.constant 6 : i32
    %c0_i32_20 = arith.constant 0 : i32
    %32 = tpu.memref_slice %arg8[%c6_i32_19, %c0_i32_20] : memref<8x128xf32, #tpu.memory_space<vmem>> -> memref<1x128xf32, #tpu.memory_space<vmem>>
    %33 = tpu.memref_slice %arg9[%c6_i32] : memref<8x!tpu.dma_semaphore, #tpu.memory_space<semaphore_mem>> -> memref<1x!tpu.dma_semaphore, #tpu.memory_space<semaphore_mem>>
    %34 = tpu.memref_squeeze %33 : memref<1x!tpu.dma_semaphore, #tpu.memory_space<semaphore_mem>> -> memref<!tpu.dma_semaphore, #tpu.memory_space<semaphore_mem>>
    tpu.enqueue_dma source(%31 : memref<1x128xf32, #tpu.memory_space<any>>) target(%32 : memref<1x128xf32, #tpu.memory_space<vmem>>) target_semaphore(%34 : memref<!tpu.dma_semaphore, #tpu.memory_space<semaphore_mem>>)
    %c7 = arith.constant 7 : index
    %35 = memref.load %arg1[%c7] : memref<8xi32, #tpu.memory_space<smem>>
    %c7_i32 = arith.constant 7 : i32
    %c0_i32_21 = arith.constant 0 : i32
    %36 = tpu.memref_slice %arg3[%35, %c0_i32_21] : memref<50x128xf32, #tpu.memory_space<any>> -> memref<1x128xf32, #tpu.memory_space<any>>
    %c7_i32_22 = arith.constant 7 : i32
    %c0_i32_23 = arith.constant 0 : i32
    %37 = tpu.memref_slice %arg8[%c7_i32_22, %c0_i32_23] : memref<8x128xf32, #tpu.memory_space<vmem>> -> memref<1x128xf32, #tpu.memory_space<vmem>>
    %38 = tpu.memref_slice %arg9[%c7_i32] : memref<8x!tpu.dma_semaphore, #tpu.memory_space<semaphore_mem>> -> memref<1x!tpu.dma_semaphore, #tpu.memory_space<semaphore_mem>>
    %39 = tpu.memref_squeeze %38 : memref<1x!tpu.dma_semaphore, #tpu.memory_space<semaphore_mem>> -> memref<!tpu.dma_semaphore, #tpu.memory_space<semaphore_mem>>
    tpu.enqueue_dma source(%36 : memref<1x128xf32, #tpu.memory_space<any>>) target(%37 : memref<1x128xf32, #tpu.memory_space<vmem>>) target_semaphore(%39 : memref<!tpu.dma_semaphore, #tpu.memory_space<semaphore_mem>>)
    %c0_24 = arith.constant 0 : index
    %40 = memref.load %arg1[%c0_24] : memref<8xi32, #tpu.memory_space<smem>>
    %c0_i32_25 = arith.constant 0 : i32
    %c0_i32_26 = arith.constant 0 : i32
    %41 = tpu.memref_slice %arg3[%40, %c0_i32_26] : memref<50x128xf32, #tpu.memory_space<any>> -> memref<1x128xf32, #tpu.memory_space<any>>
    %c0_i32_27 = arith.constant 0 : i32
    %c0_i32_28 = arith.constant 0 : i32
    %42 = tpu.memref_slice %arg8[%c0_i32_27, %c0_i32_28] : memref<8x128xf32, #tpu.memory_space<vmem>> -> memref<1x128xf32, #tpu.memory_space<vmem>>
    %43 = tpu.memref_slice %arg9[%c0_i32_25] : memref<8x!tpu.dma_semaphore, #tpu.memory_space<semaphore_mem>> -> memref<1x!tpu.dma_semaphore, #tpu.memory_space<semaphore_mem>>
    %44 = tpu.memref_squeeze %43 : memref<1x!tpu.dma_semaphore, #tpu.memory_space<semaphore_mem>> -> memref<!tpu.dma_semaphore, #tpu.memory_space<semaphore_mem>>
    tpu.wait_dma2 semaphore(%44 : memref<!tpu.dma_semaphore, #tpu.memory_space<semaphore_mem>>) src(%41 : memref<1x128xf32, #tpu.memory_space<any>>) dst(%42 : memref<1x128xf32, #tpu.memory_space<vmem>>)
    %c1_29 = arith.constant 1 : index
    %45 = memref.load %arg1[%c1_29] : memref<8xi32, #tpu.memory_space<smem>>
    %c1_i32_30 = arith.constant 1 : i32
    %c0_i32_31 = arith.constant 0 : i32
    %46 = tpu.memref_slice %arg3[%45, %c0_i32_31] : memref<50x128xf32, #tpu.memory_space<any>> -> memref<1x128xf32, #tpu.memory_space<any>>
    %c1_i32_32 = arith.constant 1 : i32
    %c0_i32_33 = arith.constant 0 : i32
    %47 = tpu.memref_slice %arg8[%c1_i32_32, %c0_i32_33] : memref<8x128xf32, #tpu.memory_space<vmem>> -> memref<1x128xf32, #tpu.memory_space<vmem>>
    %48 = tpu.memref_slice %arg9[%c1_i32_30] : memref<8x!tpu.dma_semaphore, #tpu.memory_space<semaphore_mem>> -> memref<1x!tpu.dma_semaphore, #tpu.memory_space<semaphore_mem>>
    %49 = tpu.memref_squeeze %48 : memref<1x!tpu.dma_semaphore, #tpu.memory_space<semaphore_mem>> -> memref<!tpu.dma_semaphore, #tpu.memory_space<semaphore_mem>>
    tpu.wait_dma2 semaphore(%49 : memref<!tpu.dma_semaphore, #tpu.memory_space<semaphore_mem>>) src(%46 : memref<1x128xf32, #tpu.memory_space<any>>) dst(%47 : memref<1x128xf32, #tpu.memory_space<vmem>>)
    %c2_34 = arith.constant 2 : index
    %50 = memref.load %arg1[%c2_34] : memref<8xi32, #tpu.memory_space<smem>>
    %c2_i32_35 = arith.constant 2 : i32
    %c0_i32_36 = arith.constant 0 : i32
    %51 = tpu.memref_slice %arg3[%50, %c0_i32_36] : memref<50x128xf32, #tpu.memory_space<any>> -> memref<1x128xf32, #tpu.memory_space<any>>
    %c2_i32_37 = arith.constant 2 : i32
    %c0_i32_38 = arith.constant 0 : i32
    %52 = tpu.memref_slice %arg8[%c2_i32_37, %c0_i32_38] : memref<8x128xf32, #tpu.memory_space<vmem>> -> memref<1x128xf32, #tpu.memory_space<vmem>>
    %53 = tpu.memref_slice %arg9[%c2_i32_35] : memref<8x!tpu.dma_semaphore, #tpu.memory_space<semaphore_mem>> -> memref<1x!tpu.dma_semaphore, #tpu.memory_space<semaphore_mem>>
    %54 = tpu.memref_squeeze %53 : memref<1x!tpu.dma_semaphore, #tpu.memory_space<semaphore_mem>> -> memref<!tpu.dma_semaphore, #tpu.memory_space<semaphore_mem>>
    tpu.wait_dma2 semaphore(%54 : memref<!tpu.dma_semaphore, #tpu.memory_space<semaphore_mem>>) src(%51 : memref<1x128xf32, #tpu.memory_space<any>>) dst(%52 : memref<1x128xf32, #tpu.memory_space<vmem>>)
    %c3_39 = arith.constant 3 : index
    %55 = memref.load %arg1[%c3_39] : memref<8xi32, #tpu.memory_space<smem>>
    %c3_i32_40 = arith.constant 3 : i32
    %c0_i32_41 = arith.constant 0 : i32
    %56 = tpu.memref_slice %arg3[%55, %c0_i32_41] : memref<50x128xf32, #tpu.memory_space<any>> -> memref<1x128xf32, #tpu.memory_space<any>>
    %c3_i32_42 = arith.constant 3 : i32
    %c0_i32_43 = arith.constant 0 : i32
    %57 = tpu.memref_slice %arg8[%c3_i32_42, %c0_i32_43] : memref<8x128xf32, #tpu.memory_space<vmem>> -> memref<1x128xf32, #tpu.memory_space<vmem>>
    %58 = tpu.memref_slice %arg9[%c3_i32_40] : memref<8x!tpu.dma_semaphore, #tpu.memory_space<semaphore_mem>> -> memref<1x!tpu.dma_semaphore, #tpu.memory_space<semaphore_mem>>
    %59 = tpu.memref_squeeze %58 : memref<1x!tpu.dma_semaphore, #tpu.memory_space<semaphore_mem>> -> memref<!tpu.dma_semaphore, #tpu.memory_space<semaphore_mem>>
    tpu.wait_dma2 semaphore(%59 : memref<!tpu.dma_semaphore, #tpu.memory_space<semaphore_mem>>) src(%56 : memref<1x128xf32, #tpu.memory_space<any>>) dst(%57 : memref<1x128xf32, #tpu.memory_space<vmem>>)
    %c4_44 = arith.constant 4 : index
    %60 = memref.load %arg1[%c4_44] : memref<8xi32, #tpu.memory_space<smem>>
    %c4_i32_45 = arith.constant 4 : i32
    %c0_i32_46 = arith.constant 0 : i32
    %61 = tpu.memref_slice %arg3[%60, %c0_i32_46] : memref<50x128xf32, #tpu.memory_space<any>> -> memref<1x128xf32, #tpu.memory_space<any>>
    %c4_i32_47 = arith.constant 4 : i32
    %c0_i32_48 = arith.constant 0 : i32
    %62 = tpu.memref_slice %arg8[%c4_i32_47, %c0_i32_48] : memref<8x128xf32, #tpu.memory_space<vmem>> -> memref<1x128xf32, #tpu.memory_space<vmem>>
    %63 = tpu.memref_slice %arg9[%c4_i32_45] : memref<8x!tpu.dma_semaphore, #tpu.memory_space<semaphore_mem>> -> memref<1x!tpu.dma_semaphore, #tpu.memory_space<semaphore_mem>>
    %64 = tpu.memref_squeeze %63 : memref<1x!tpu.dma_semaphore, #tpu.memory_space<semaphore_mem>> -> memref<!tpu.dma_semaphore, #tpu.memory_space<semaphore_mem>>
    tpu.wait_dma2 semaphore(%64 : memref<!tpu.dma_semaphore, #tpu.memory_space<semaphore_mem>>) src(%61 : memref<1x128xf32, #tpu.memory_space<any>>) dst(%62 : memref<1x128xf32, #tpu.memory_space<vmem>>)
    %c5_49 = arith.constant 5 : index
    %65 = memref.load %arg1[%c5_49] : memref<8xi32, #tpu.memory_space<smem>>
    %c5_i32_50 = arith.constant 5 : i32
    %c0_i32_51 = arith.constant 0 : i32
    %66 = tpu.memref_slice %arg3[%65, %c0_i32_51] : memref<50x128xf32, #tpu.memory_space<any>> -> memref<1x128xf32, #tpu.memory_space<any>>
    %c5_i32_52 = arith.constant 5 : i32
    %c0_i32_53 = arith.constant 0 : i32
    %67 = tpu.memref_slice %arg8[%c5_i32_52, %c0_i32_53] : memref<8x128xf32, #tpu.memory_space<vmem>> -> memref<1x128xf32, #tpu.memory_space<vmem>>
    %68 = tpu.memref_slice %arg9[%c5_i32_50] : memref<8x!tpu.dma_semaphore, #tpu.memory_space<semaphore_mem>> -> memref<1x!tpu.dma_semaphore, #tpu.memory_space<semaphore_mem>>
    %69 = tpu.memref_squeeze %68 : memref<1x!tpu.dma_semaphore, #tpu.memory_space<semaphore_mem>> -> memref<!tpu.dma_semaphore, #tpu.memory_space<semaphore_mem>>
    tpu.wait_dma2 semaphore(%69 : memref<!tpu.dma_semaphore, #tpu.memory_space<semaphore_mem>>) src(%66 : memref<1x128xf32, #tpu.memory_space<any>>) dst(%67 : memref<1x128xf32, #tpu.memory_space<vmem>>)
    %c6_54 = arith.constant 6 : index
    %70 = memref.load %arg1[%c6_54] : memref<8xi32, #tpu.memory_space<smem>>
    %c6_i32_55 = arith.constant 6 : i32
    %c0_i32_56 = arith.constant 0 : i32
    %71 = tpu.memref_slice %arg3[%70, %c0_i32_56] : memref<50x128xf32, #tpu.memory_space<any>> -> memref<1x128xf32, #tpu.memory_space<any>>
    %c6_i32_57 = arith.constant 6 : i32
    %c0_i32_58 = arith.constant 0 : i32
    %72 = tpu.memref_slice %arg8[%c6_i32_57, %c0_i32_58] : memref<8x128xf32, #tpu.memory_space<vmem>> -> memref<1x128xf32, #tpu.memory_space<vmem>>
    %73 = tpu.memref_slice %arg9[%c6_i32_55] : memref<8x!tpu.dma_semaphore, #tpu.memory_space<semaphore_mem>> -> memref<1x!tpu.dma_semaphore, #tpu.memory_space<semaphore_mem>>
    %74 = tpu.memref_squeeze %73 : memref<1x!tpu.dma_semaphore, #tpu.memory_space<semaphore_mem>> -> memref<!tpu.dma_semaphore, #tpu.memory_space<semaphore_mem>>
    tpu.wait_dma2 semaphore(%74 : memref<!tpu.dma_semaphore, #tpu.memory_space<semaphore_mem>>) src(%71 : memref<1x128xf32, #tpu.memory_space<any>>) dst(%72 : memref<1x128xf32, #tpu.memory_space<vmem>>)
    %c7_59 = arith.constant 7 : index
    %75 = memref.load %arg1[%c7_59] : memref<8xi32, #tpu.memory_space<smem>>
    %c7_i32_60 = arith.constant 7 : i32
    %c0_i32_61 = arith.constant 0 : i32
    %76 = tpu.memref_slice %arg3[%75, %c0_i32_61] : memref<50x128xf32, #tpu.memory_space<any>> -> memref<1x128xf32, #tpu.memory_space<any>>
    %c7_i32_62 = arith.constant 7 : i32
    %c0_i32_63 = arith.constant 0 : i32
    %77 = tpu.memref_slice %arg8[%c7_i32_62, %c0_i32_63] : memref<8x128xf32, #tpu.memory_space<vmem>> -> memref<1x128xf32, #tpu.memory_space<vmem>>
    %78 = tpu.memref_slice %arg9[%c7_i32_60] : memref<8x!tpu.dma_semaphore, #tpu.memory_space<semaphore_mem>> -> memref<1x!tpu.dma_semaphore, #tpu.memory_space<semaphore_mem>>
    %79 = tpu.memref_squeeze %78 : memref<1x!tpu.dma_semaphore, #tpu.memory_space<semaphore_mem>> -> memref<!tpu.dma_semaphore, #tpu.memory_space<semaphore_mem>>
    tpu.wait_dma2 semaphore(%79 : memref<!tpu.dma_semaphore, #tpu.memory_space<semaphore_mem>>) src(%76 : memref<1x128xf32, #tpu.memory_space<any>>) dst(%77 : memref<1x128xf32, #tpu.memory_space<vmem>>)
    %c0_64 = arith.constant 0 : index
    %c0_65 = arith.constant 0 : index
    %80 = vector.load %arg8[%c0_64, %c0_65] : memref<8x128xf32, #tpu.memory_space<vmem>>, vector<8x128xf32>
    %c0_66 = arith.constant 0 : index
    %c0_67 = arith.constant 0 : index
    %81 = vector.load %arg2[%c0_66, %c0_67] : memref<8x32xf32, #tpu.memory_space<vmem>>, vector<8x32xf32>
    %82 = arith.truncf %80 : vector<8x128xf32> to vector<8x128xbf16>
    %c0_68 = arith.constant 0 : index
    %c0_69 = arith.constant 0 : index
    %83 = vector.load %arg4[%c0_68, %c0_69] : memref<128x96xbf16, #tpu.memory_space<vmem>>, vector<128x96xbf16>
    %cst = arith.constant dense<0.000000e+00> : vector<8x96xf32>
    %84 = tpu.matmul %82, %83, %cst {dimension_numbers = #tpu.dot_dimension_numbers<[1], [0], [0], [1], [0, 0, 1, 1], [], []>} : vector<8x128xbf16>, vector<128x96xbf16>, vector<8x96xf32> -> vector<8x96xf32>
    %c0_70 = arith.constant 0 : index
    %c0_71 = arith.constant 0 : index
    %85 = vector.load %arg6[%c0_70, %c0_71] : memref<2x96xf32, #tpu.memory_space<vmem>>, vector<1x96xf32>
    %86 = vector.broadcast %85 : vector<1x96xf32> to vector<8x96xf32>
    %87 = arith.addf %84, %86 : vector<8x96xf32>
    %88 = arith.truncf %81 : vector<8x32xf32> to vector<8x32xbf16>
    %c0_72 = arith.constant 0 : index
    %c0_73 = arith.constant 0 : index
    %89 = vector.load %arg5[%c0_72, %c0_73] : memref<32x96xbf16, #tpu.memory_space<vmem>>, vector<32x96xbf16>
    %cst_74 = arith.constant dense<0.000000e+00> : vector<8x96xf32>
    %90 = tpu.matmul %88, %89, %cst_74 {dimension_numbers = #tpu.dot_dimension_numbers<[1], [0], [0], [1], [0, 0, 1, 1], [], []>} : vector<8x32xbf16>, vector<32x96xbf16>, vector<8x96xf32> -> vector<8x96xf32>
    %c1_75 = arith.constant 1 : index
    %c0_76 = arith.constant 0 : index
    %91 = vector.load %arg6[%c1_75, %c0_76] : memref<2x96xf32, #tpu.memory_space<vmem>>, vector<1x96xf32>
    %92 = vector.broadcast %91 : vector<1x96xf32> to vector<8x96xf32>
    %93 = arith.addf %90, %92 : vector<8x96xf32>
    %94 = vector.extract_strided_slice %87 {offsets = [0, 0], sizes = [8, 32], strides = [1, 1]} : vector<8x96xf32> to vector<8x32xf32>
    %95 = vector.extract_strided_slice %93 {offsets = [0, 0], sizes = [8, 32], strides = [1, 1]} : vector<8x96xf32> to vector<8x32xf32>
    %96 = arith.addf %94, %95 : vector<8x32xf32>
    %97 = arith.negf %96 : vector<8x32xf32>
    %98 = math.exp %97 : vector<8x32xf32>
    %cst_77 = arith.constant 1.000000e+00 : f32
    %99 = vector.broadcast %cst_77 : f32 to vector<8x32xf32>
    %100 = arith.addf %99, %98 : vector<8x32xf32>
    %101 = arith.divf %99, %100 : vector<8x32xf32>
    %102 = vector.extract_strided_slice %87 {offsets = [0, 32], sizes = [8, 32], strides = [1, 1]} : vector<8x96xf32> to vector<8x32xf32>
    %103 = vector.extract_strided_slice %93 {offsets = [0, 32], sizes = [8, 32], strides = [1, 1]} : vector<8x96xf32> to vector<8x32xf32>
    %104 = arith.addf %102, %103 : vector<8x32xf32>
    %105 = arith.negf %104 : vector<8x32xf32>
    %106 = math.exp %105 : vector<8x32xf32>
    %cst_78 = arith.constant 1.000000e+00 : f32
    %107 = vector.broadcast %cst_78 : f32 to vector<8x32xf32>
    %108 = arith.addf %107, %106 : vector<8x32xf32>
    %109 = arith.divf %107, %108 : vector<8x32xf32>
    %110 = vector.extract_strided_slice %87 {offsets = [0, 64], sizes = [8, 32], strides = [1, 1]} : vector<8x96xf32> to vector<8x32xf32>
    %111 = vector.extract_strided_slice %93 {offsets = [0, 64], sizes = [8, 32], strides = [1, 1]} : vector<8x96xf32> to vector<8x32xf32>
    %112 = arith.mulf %101, %111 : vector<8x32xf32>
    %113 = arith.addf %110, %112 : vector<8x32xf32>
    %114 = math.tanh %113 : vector<8x32xf32>
    %cst_79 = arith.constant 1.000000e+00 : f32
    %115 = vector.broadcast %cst_79 : f32 to vector<8x32xf32>
    %116 = arith.subf %115, %109 : vector<8x32xf32>
    %117 = arith.mulf %116, %114 : vector<8x32xf32>
    %118 = arith.mulf %109, %81 : vector<8x32xf32>
    %119 = arith.addf %117, %118 : vector<8x32xf32>
    %c0_80 = arith.constant 0 : index
    %c0_81 = arith.constant 0 : index
    %120 = vector.load %arg7[%c0_80, %c0_81] : memref<8x32xf32, #tpu.memory_space<vmem>>, vector<8x32xf32>
    tpu.vector_store %arg7[%c0_80, %c0_81], %119 {strides = array<i32>} : memref<8x32xf32, #tpu.memory_space<vmem>>, vector<8x32xf32>,
    return
  }
  func.func @transform_0(%arg0: i32, %arg1: memref<8xi32, #tpu.memory_space<smem>>) -> (i32, i32) {
    %c0_i32 = arith.constant 0 : i32
    %c0_i32_0 = arith.constant 0 : i32
    %c0_i32_1 = arith.constant 0 : i32
    return %c0_i32, %c0_i32_0 : i32, i32
  }
  func.func @transform_2(%arg0: i32, %arg1: memref<8xi32, #tpu.memory_space<smem>>) -> (i32, i32) {
    %c0_i32 = arith.constant 0 : i32
    %c0_i32_0 = arith.constant 0 : i32
    %c0_i32_1 = arith.constant 0 : i32
    return %c0_i32, %c0_i32_0 : i32, i32
  }
  func.func @transform_3(%arg0: i32, %arg1: memref<8xi32, #tpu.memory_space<smem>>) -> (i32, i32) {
    %c0_i32 = arith.constant 0 : i32
    %c0_i32_0 = arith.constant 0 : i32
    %c0_i32_1 = arith.constant 0 : i32
    return %c0_i32, %c0_i32_0 : i32, i32
  }
  func.func @transform_4(%arg0: i32, %arg1: memref<8xi32, #tpu.memory_space<smem>>) -> (i32, i32) {
    %c0_i32 = arith.constant 0 : i32
    %c0_i32_0 = arith.constant 0 : i32
    %c0_i32_1 = arith.constant 0 : i32
    return %c0_i32, %c0_i32_0 : i32, i32
  }
  func.func @transform_5(%arg0: i32, %arg1: memref<8xi32, #tpu.memory_space<smem>>) -> (i32, i32) {
    %c0_i32 = arith.constant 0 : i32
    %c0_i32_0 = arith.constant 0 : i32
    %c0_i32_1 = arith.constant 0 : i32
    return %c0_i32, %c0_i32_0 : i32, i32
  }
}

</mosaic_0001>

<bundles_post_ra>
// kernel: encoder_rnn_forward.1
= control target key start
LH: loop header
LB: loop body
LE: loop exit
PB: predicated region body
PF: predicated region fallthrough
CT: control target
= control target key end

     0   :  { %s1049_s0 = inlined_call_operand.vmem [shape: s32[8], index: 0, kind: input, shape index: {}]   ;;  %s1050_s1 = inlined_call_operand.vmem [shape: f32[8,32], index: 1, kind: input, shape index: {}, may-alias: {1,6}]   ;;  %s1051_s2 = inlined_call_operand.vmem [shape: f32[50,128], index: 2, kind: input, shape index: {}]   ;;  %s1052_s3 = inlined_call_operand.vmem [shape: bf16[128,96], index: 3, kind: input, shape index: {}]   ;;  %s1053_s4 = inlined_call_operand.vmem [shape: bf16[32,96], index: 4, kind: input, shape index: {}]   ;;  %s1054_s5 = inlined_call_operand.vmem [shape: f32[2,96], index: 5, kind: input, shape index: {}]   ;;  %s1055_s6 = inlined_call_operand.vmem [shape: f32[8,32], index: 6, kind: output, shape index: {}, may-alias: {1,6}]  }
   0x1   :  { %s11_s23 = sshll.u32 %s1049_s0, 4  ;;  %s12_s23 = int_to_ptr.vmem [resolvable:$true] %s11_s23 }
   0x2   :  { %s907_s24 = scalar_lea.vmem %s12_s23, 16  ;;  %p912_p1 = scmp.lt.s32.totalorder %s12_s23, %s12_s23 }
   0x3   :  { %p908_p0 = scmp.ne.s32.totalorder %s12_s23, %s907_s24  ;;  %p913_p2 = scmp.lt.s32.totalorder %s907_s24, %s907_s24 }
   0x5   :  { %p914_p3 = por %p913_p2, %p912_p1 }
   0x7   :  { %p915_p4 = pnand %p914_p3, %p908_p0 }
   0x9   :  { %918 = shalt.err (!%p915_p4)  }
   0xa   :  { %s937_s25 = smov [#allocation5]  }
   0xb   :  { %14 = dma.vmem_to_smem %s12_s23, 16, %s937_s25, [#allocation4] }
   0xc   :  { %919 = dma.done.wait [#allocation4], 16 }
   0xd   :  { %920 = vsyncadd [#allocation4], 4294967280 }
   0xe   :  { %16 = sfence }
   0xf   :  { %s26_s26 = sld [smem:[#allocation5]] }
  0x15   :  { %s27_s29 = scalar_lea.vmem %s1051_s2, %s26_s26 }
  0x16   :  { %v46_v0 = vld [vmem:[%s27_s29] sm:$0x1] }
  0x17   :  { %47 = vst [vmem:[#allocation2] sm:$0x1] %v46_v0 }
  0x18   :  { %73 = vsyncadd [#allocation3], 16  ;;  %s816_s0 = sld [smem:[#allocation5 + $0x1]] }
  0x1e   :  { %s75_s8 = scalar_lea.vmem %s1051_s2, %s816_s0 }
  0x1f   :  { %v96_v1 = vld [vmem:[%s75_s8] sm:$0x1] }
  0x20   :  { %97 = vst [vmem:[#allocation2 + $0x1] sm:$0x1] %v96_v1 }
  0x21   :  { %123 = vsyncadd [#allocation3 + $0x1], 16  ;;  %s817_s9 = sld [smem:[#allocation5 + $0x2]] }
  0x27   :  { %s125_s12 = scalar_lea.vmem %s1051_s2, %s817_s9 }
  0x28   :  { %v146_v2 = vld [vmem:[%s125_s12] sm:$0x1] }
  0x29   :  { %147 = vst [vmem:[#allocation2 + $0x2] sm:$0x1] %v146_v2 }
  0x2a   :  { %173 = vsyncadd [#allocation3 + $0x2], 16  ;;  %s818_s13 = sld [smem:[#allocation5 + $0x3]] }
  0x30   :  { %s175_s16 = scalar_lea.vmem %s1051_s2, %s818_s13 }
  0x31   :  { %v196_v3 = vld [vmem:[%s175_s16] sm:$0x1] }
  0x32   :  { %197 = vst [vmem:[#allocation2 + $0x3] sm:$0x1] %v196_v3 }
  0x33   :  { %223 = vsyncadd [#allocation3 + $0x3], 16  ;;  %s819_s17 = sld [smem:[#allocation5 + $0x4]] }
  0x39   :  { %s225_s20 = scalar_lea.vmem %s1051_s2, %s819_s17 }
  0x3a   :  { %v246_v4 = vld [vmem:[%s225_s20] sm:$0x1] }
  0x3b   :  { %247 = vst [vmem:[#allocation2 + $0x4] sm:$0x1] %v246_v4 }
  0x3c   :  { %273 = vsyncadd [#allocation3 + $0x4], 16  ;;  %s820_s21 = sld [smem:[#allocation5 + $0x5]] }
  0x42   :  { %s275_s24 = scalar_lea.vmem %s1051_s2, %s820_s21 }
  0x43   :  { %v296_v5 = vld [vmem:[%s275_s24] sm:$0x1] }
  0x44   :  { %297 = vst [vmem:[#allocation2 + $0x5] sm:$0x1] %v296_v5 }
  0x45   :  { %323 = vsyncadd [#allocation3 + $0x5], 16  ;;  %s821_s25 = sld [smem:[#allocation5 + $0x6]] }
  0x4b   :  { %s325_s28 = scalar_lea.vmem %s1051_s2, %s821_s25 }
  0x4c   :  { %v346_v6 = vld [vmem:[%s325_s28] sm:$0x1] }
  0x4d   :  { %347 = vst [vmem:[#allocation2 + $0x6] sm:$0x1] %v346_v6 }
  0x4e   :  { %373 = vsyncadd [#allocation3 + $0x6], 16  ;;  %s822_s29 = sld [smem:[#allocation5 + $0x7]] }
  0x54   :  { %s375_s7 = scalar_lea.vmem %s1051_s2, %s822_s29 }
  0x55   :  { %v396_v7 = vld [vmem:[%s375_s7] sm:$0x1] }
  0x56   :  { %397 = vst [vmem:[#allocation2 + $0x7] sm:$0x1] %v396_v7 }
  0x57   :  { %423 = vsyncadd [#allocation3 + $0x7], 16 }
  0x58   :  { %921 = dma.done.wait [#allocation3], 16 }
  0x59   :  { %922 = vsyncadd [#allocation3], 4294967280 }
  0x5a   :  { %923 = dma.done.wait [#allocation3 + $0x1], 16 }
  0x5b   :  { %924 = vsyncadd [#allocation3 + $0x1], 4294967280 }
  0x5c   :  { %925 = dma.done.wait [#allocation3 + $0x2], 16 }
  0x5d   :  { %926 = vsyncadd [#allocation3 + $0x2], 4294967280 }
  0x5e   :  { %927 = dma.done.wait [#allocation3 + $0x3], 16 }
  0x5f   :  { %928 = vsyncadd [#allocation3 + $0x3], 4294967280 }
  0x60   :  { %929 = dma.done.wait [#allocation3 + $0x4], 16 }
  0x61   :  { %930 = vsyncadd [#allocation3 + $0x4], 4294967280 }
  0x62   :  { %931 = dma.done.wait [#allocation3 + $0x5], 16 }
  0x63   :  { %932 = vsyncadd [#allocation3 + $0x5], 4294967280 }
  0x64   :  { %933 = dma.done.wait [#allocation3 + $0x6], 16 }
  0x65   :  { %934 = vsyncadd [#allocation3 + $0x6], 4294967280 }
  0x66   :  { %935 = dma.done.wait [#allocation3 + $0x7], 16 }
  0x67   :  { %936 = vsyncadd [#allocation3 + $0x7], 4294967280  ;;  %v938_v8 = vmov 0.0   ;;  %vm939_vm0 = vmmov 0   ;;  %v891_v9 = vld [vmem:[%s1052_s3 + $0x38] sm:$0xff]   ;;  %v892_v10 = vld [vmem:[%s1053_s4 + $0x8] sm:$0xff]  }
  0x68   :  { %857 = vmatprep.subr.bf16.mxu0 %v938_v8  ;;  %877 = vmatprep.subr.bf16.mxu1 %v938_v8  ;;  %v893_v11 = vld [vmem:[%s1052_s3 + $0x30] sm:$0xff]   ;;  %v894_v12 = vld [vmem:[%s1053_s4] sm:$0xff]   ;;  %v895_v15 = vld [vmem:[%s1052_s3 + $0x28] sm:$0xff]   ;;  %vm583_vm1 = vcmask 261120   ;;  %s940_s29 = smov 64   ;;  %s941_s30 = smov 96  }
  0x69   :  { %881 = vmatprep.mubr.msk.bf16.mxu1 %vm939_vm0, %v938_v8  ;;  %873 = vmatprep.mubr.msk.bf16.mxu0 %vm939_vm0, %v938_v8  ;;  %v450_v13 = vld [vmem:[%s1050_s1] sm:$0xff]  ;;  %v897_v17 = vld [vmem:[%s1052_s3 + $0x18] sm:$0xff]   ;;  %v898_v18 = vld [vmem:[%s1052_s3 + $0x10] sm:$0xff]   ;;  %s942_s7 = smov 32  }
  0x6a   :  { %858 = vmatpush3.bf16.msra.mxu0 %v891_v9  ;;  %878 = vmatpush3.bf16.msra.mxu1 %v892_v10  ;;  %v561_v14 = vpack.c.bf16 %v450_v13, %v450_v13  ;;  %v896_v16 = vld [vmem:[%s1052_s3 + $0x20] sm:$0xff]   ;;  %v899_v19 = vld [vmem:[%s1052_s3 + $0x8] sm:$0xff]  }
  0x6b   :  { %859 = vmatprep.subr.bf16.mxu0 %v938_v8  ;;  %879 = vmatprep.subr.bf16.mxu1 %v938_v8  ;;  %v900_v20 = vld [vmem:[%s1052_s3] sm:$0xff]  }
  0x6c   :  { %v449_v21 = vld [vmem:[#allocation2] sm:$0xff] }
  0x6d   :  { %v451_v22 = vpack.c.bf16 %v449_v21, %v449_v21  ;;  %v832_v23 = vld [vmem:[%s1054_s5 + $0x1] ss:$0 sm:$0xff]  ;;  %v823_v33 = vld [vmem:[%s1054_s5] ss:$0 sm:$0xff] }
  0x6e   :  { %860 = vmatpush3.bf16.msra.mxu0 %v893_v11  ;;  %880 = vmatpush3.bf16.msra.mxu1 %v894_v12 }
  0x6f   :  { %861 = vmatprep.subr.bf16.mxu0 %v938_v8 }
  0x71   :  { %882 = vmatmul.mubr.msk.bf16.vlgmr.msra.gmra.mxu1 %vm583_vm1, %v561_v14 }
  0x72   :  { %862 = vmatpush3.bf16.msra.mxu0 %v895_v15 }
  0x73   :  { %863 = vmatprep.subr.bf16.mxu0 %v938_v8 }
  0x76   :  { %864 = vmatpush3.bf16.msra.mxu0 %v896_v16 }
  0x77   :  { %865 = vmatprep.subr.bf16.mxu0 %v938_v8 }
  0x7a   :  { %866 = vmatpush3.bf16.msra.mxu0 %v897_v17 }
  0x7b   :  { %867 = vmatprep.subr.bf16.mxu0 %v938_v8 }
  0x7e   :  { %868 = vmatpush3.bf16.msra.mxu0 %v898_v18 }
  0x7f   :  { %869 = vmatprep.subr.bf16.mxu0 %v938_v8 }
  0x82   :  { %870 = vmatpush3.bf16.msra.mxu0 %v899_v19 }
  0x83   :  { %871 = vmatprep.subr.bf16.mxu0 %v938_v8 }
  0x86   :  { %872 = vmatpush3.bf16.msra.mxu0 %v900_v20 }
  0x89   :  { %874 = vmatmul.mubr.bf16.vlgmr.msra.gmra.mxu0 %v451_v22 }
 0x131   :  { %v621_v24 = vpop.f32.mrf.mxu1 }
 0x132   :  { %v622_v25 = vadd.f32 %v832_v23, %v621_v24 }
 0x133   :  { %v883_v26 = vpop.f32.mrf.mxu1 }
 0x134   :  { %635 = vrot.lane.b32.xlu0 %v622_v25, %s940_s29 }
 0x135   :  { %v624_v27 = vpop.f32.mrf.mxu1 }
 0x137   :  { %v884_v28 = vpop.f32.mrf.mxu1 }
 0x149   :  { %v555_v29 = vpop.f32.mrf.mxu0 }
 0x14a   :  { %v556_v34 = vadd.f32 %v823_v33, %v555_v29 }
 0x14b   :  { %v875_v30 = vpop.f32.mrf.mxu0 }
 0x14c   :  { %v627_v35 = vadd.f32 %v622_v25, %v556_v34 }
 0x14d   :  { %v558_v31 = vpop.f32.mrf.mxu0 }
 0x14e   :  { %v836_v36 = vmul.f32 -1.442695, %v627_v35 }
 0x14f   :  { %v876_v32 = vpop.f32.mrf.mxu0 }
 0x150   :  { %901 = vpow2.f32 %v836_v36 }
 0x15d   :  { %v902_v37 = vpop.eup %901 }
 0x15e   :  { %v631_v38 = vadd.f32 1.0, %v902_v37 }
 0x160   :  { %903 = vrcp.f32 %v631_v38 }
 0x16d   :  { %v904_v39 = vpop.eup %903 }
 0x16e   :  { %v645_v46 = vsub.f32 1.0, %v904_v39 }
 0x1a6   :  { %v636_v40 = vpop.permute.xlu0 %635 }
 0x1a7   :  { %v638_v41 = vmul.f32 %v904_v39, %v636_v40 }
 0x1a9   :  { %640 = vrot.lane.b32.xlu0 %v638_v41, %s940_s29 }
 0x21b   :  { %v641_v42 = vpop.permute.xlu0 %640 }
 0x21c   :  { %v643_v43 = vadd.f32 %v641_v42, %v556_v34 }
 0x21e   :  { %905 = vtanh.f32 %v643_v43 }
 0x22b   :  { %v906_v44 = vpop.eup %905 }
 0x22c   :  { %647 = vrot.lane.b32.xlu1 %v906_v44, %s941_s30 }
 0x230   :  { %652 = vrot.lane.b32.xlu1 %v450_v13, %s942_s7 }
 0x29e   :  { %v648_v45 = vpop.permute.xlu1 %647 }
 0x29f   :  { %v650_v48 = vmul.f32 %v648_v45, %v645_v46 }
 0x2a2   :  { %v653_v47 = vpop.permute.xlu1 %652 }
 0x2a3   :  { %v655_v49 = vmul.f32 %v904_v39, %v653_v47 }
 0x2a5   :  { %v656_v50 = vadd.f32 %v655_v49, %v650_v48 }
 0x2a7   :  { %658 = vrot.lane.b32.xlu0 %v656_v50, %s941_s30 }
 0x319   :  { %v659_v51 = vpop.permute.xlu0 %658 }
 0x31a   :  { %661 = vst.msk [vmem:[%s1055_s6] sm:$0xff] %vm583_vm1, %v659_v51 }
 0x31b   :  { %666 = vsyncmov [#allocation3] }
 0x31e   :  { %s667_s8 = vpop.sfrf %666 }
 0x31f   :  { %p837_p5 = scmp.ne.s32.totalorder %s667_s8, 0 }
 0x321   :  { %671 = shalt.err (%p837_p5)  }
 0x322   :  { %673 = vsyncmov [#allocation3 + $0x1] }
 0x325   :  { %s674_s9 = vpop.sfrf %673 }
 0x326   :  { %p838_p6 = scmp.ne.s32.totalorder %s674_s9, 0 }
 0x328   :  { %678 = shalt.err (%p838_p6)  }
 0x329   :  { %680 = vsyncmov [#allocation3 + $0x2] }
 0x32c   :  { %s681_s10 = vpop.sfrf %680 }
 0x32d   :  { %p839_p7 = scmp.ne.s32.totalorder %s681_s10, 0 }
 0x32f   :  { %685 = shalt.err (%p839_p7)  }
 0x330   :  { %687 = vsyncmov [#allocation3 + $0x3] }
 0x333   :  { %s688_s11 = vpop.sfrf %687 }
 0x334   :  { %p840_p8 = scmp.ne.s32.totalorder %s688_s11, 0 }
 0x336   :  { %692 = shalt.err (%p840_p8)  }
 0x337   :  { %694 = vsyncmov [#allocation3 + $0x4] }
 0x33a   :  { %s695_s12 = vpop.sfrf %694 }
 0x33b   :  { %p841_p9 = scmp.ne.s32.totalorder %s695_s12, 0 }
 0x33d   :  { %699 = shalt.err (%p841_p9)  }
 0x33e   :  { %701 = vsyncmov [#allocation3 + $0x5] }
 0x341   :  { %s702_s6 = vpop.sfrf %701 }
 0x342   :  { %p842_p10 = scmp.ne.s32.totalorder %s702_s6, 0 }
 0x344   :  { %706 = shalt.err (%p842_p10)  }
 0x345   :  { %708 = vsyncmov [#allocation3 + $0x6] }
 0x348   :  { %s709_s13 = vpop.sfrf %708 }
 0x349   :  { %p843_p11 = scmp.ne.s32.totalorder %s709_s13, 0 }
 0x34b   :  { %713 = shalt.err (%p843_p11)  }
 0x34c   :  { %715 = vsyncmov [#allocation3 + $0x7] }
 0x34f   :  { %s716_s14 = vpop.sfrf %715 }
 0x350   :  { %p844_p12 = scmp.ne.s32.totalorder %s716_s14, 0 }
 0x352   :  { %720 = shalt.err (%p844_p12)  }

</bundles_post_ra>
